<compile_context>
chip_gen: v7x
topology: tpu7x:2x2x1
jax: 0.10.0
libtpu: 0.0.40
codegen_flags: <defaults>
</compile_context>

<pallas_src>
import functools

import jax
import jax.numpy as jnp
import numpy as np
from jax.experimental import pallas as pl
from jax.experimental.pallas import tpu as pltpu

_LN_EPS = 1e-5            # PyTorch nn.LayerNorm default eps
_INV_SQRT2 = 0.7071067811865476


# ------------------------------ kernel math -------------------------------- #

def _erf(x):
    # Abramowitz & Stegun 7.1.26 polynomial, |error| < 1.5e-7: matches PyTorch's
    # exact-erf GELU to f32 precision and lowers to pure VPU/EUP ops.  The
    # divide uses the approx EUP reciprocal (otherwise idle here) instead of a
    # multi-op VALU Newton divide.
    p = 0.3275911
    a1, a2, a3, a4, a5 = (0.254829592, -0.284496736, 1.421413741,
                          -1.453152027, 1.061405429)
    ax = jnp.abs(x)
    t = pl.reciprocal(1.0 + p * ax, approx=True)
    poly = ((((a5 * t + a4) * t + a3) * t + a2) * t + a1) * t
    y = 1.0 - poly * jnp.exp(-ax * ax)
    return jnp.where(x >= 0.0, y, -y)


def _gelu(x):
    # Exact (erf-based) GELU, matching PyTorch nn.GELU() default.
    return 0.5 * x * (1.0 + _erf(x * _INV_SQRT2))


def _layer_norm(h, gamma, beta):
    mu = jnp.mean(h, axis=-1, keepdims=True)
    var = jnp.mean(jnp.square(h - mu), axis=-1, keepdims=True)
    return (h - mu) * jax.lax.rsqrt(var + _LN_EPS) * gamma + beta


def _mlp_decoder_kernel(x_ref, w_in_ref, b_in_ref, ln_g_ref, ln_b_ref,
                        w_h_ref, b_h_ref, w_out_ref, b_out_ref, o_ref):
    """Fused forward over one tile of rows.  All operands are VMEM resident.

    Matmul operands are bf16 (MXU-native); accumulation, LayerNorm and GELU
    stay in f32.
    """
    # Input projection + GELU.  x / w_in are bf16 and zero-padded to a
    # 128-lane K, so this is a clean (tm,128)@(128,H) MXU dot.
    h = jnp.dot(x_ref[...], w_in_ref[...],
                preferred_element_type=jnp.float32) + b_in_ref[...]
    h = _gelu(h)
    # 3 x [LayerNorm -> Linear -> GELU]; hidden-layer params are stacked along
    # a leading axis of 3 so they arrive as single VMEM blocks (static unroll).
    for i in range(3):
        h = _layer_norm(h, ln_g_ref[i], ln_b_ref[i])
        h = jnp.dot(h.astype(jnp.bfloat16), w_h_ref[i],
                    preferred_element_type=jnp.float32) + b_h_ref[i]
        h = _gelu(h)
    # Output projection.  Output lanes are padded to a multiple of 128 so the
    # store / output DMA is unmasked and lane-dense.
    o_ref[...] = (jnp.dot(h.astype(jnp.bfloat16), w_out_ref[...],
                          preferred_element_type=jnp.float32)
                  + b_out_ref[...]).astype(o_ref.dtype)


# -------------------------------- wrapper ----------------------------------- #

def _round_up(x, m):
    return ((x + m - 1) // m) * m


def _vmem_limit_bytes(tm, d_in_p, hidden, d_out_p):
    """Explicit scoped-VMEM budget: bf16 weights + f32 biases/LN params with a
    2x double-buffering factor, the in/out activation tiles, and slack."""
    weights = (d_in_p * hidden + 3 * hidden * hidden + hidden * d_out_p) * 2  # bf16
    smalls = (10 * hidden + d_out_p) * 4                                      # f32
    acts = tm * (d_in_p * 2 + d_out_p * 4)
    est = 2 * (weights + smalls + acts) + (4 << 20)
    return int(min(64 << 20, max(16 << 20, est)))


@functools.partial(jax.jit, static_argnames=("block_m",))
def mlp_decoder_forward(x, params, *, block_m=256):
    """x: (batch, 1, input_dim) -> (batch, 1, output_dim).

    block_m=256 matches the 256-wide v6e/v7x MXU; sweep 128 on v5e if a bundle
    dump shows vreg spills in the fused LN/GELU epilogue.
    """
    B, S, d_in = x.shape
    w_in, b_in = params["w_in"], params["b_in"]
    ln_g, ln_b = params["ln_g"], params["ln_b"]
    w_h, b_h = params["w_h"], params["b_h"]
    w_out, b_out = params["w_out"], params["b_out"]
    hidden = w_in.shape[1]
    d_out = w_out.shape[1]

    # Lane-dense feature dims: zero-pad K (input features) and N (output
    # features) to multiples of 128.  Zero K-columns contribute nothing to the
    # dot; padded output lanes are zero and sliced off below.
    d_in_p = _round_up(d_in, 128)
    d_out_p = _round_up(d_out, 128)

    m = B * S
    m8 = _round_up(max(m, 1), 8)
    # Split rows into >=2 grid steps whenever possible so ("parallel",) can
    # feed both v7x TensorCores; 8-row sublane granularity is the floor.
    tm = max(8, min(block_m, _round_up((m8 + 1) // 2, 8)))
    m_pad = _round_up(m8, tm)

    # One fused pad (+ cast to bf16 for the MXU) of the flattened input rows.
    x2 = jnp.pad(x.reshape(m, d_in),
                 ((0, m_pad - m), (0, d_in_p - d_in))).astype(jnp.bfloat16)

    # bf16 matmul operands (MXU native); biases / LN params stay f32.
    # TODO(synk): persist these cast/padded weights across calls; for tiny
    # per-step batches the per-call weight cast + DMA dominates.
    w_in_p = jnp.pad(w_in, ((0, d_in_p - d_in), (0, 0))).astype(jnp.bfloat16)
    w_h_b = w_h.astype(jnp.bfloat16)
    w_out_p = jnp.pad(w_out, ((0, 0), (0, d_out_p - d_out))).astype(jnp.bfloat16)
    b_out_p = jnp.pad(b_out, ((0, 0), (0, d_out_p - d_out)))

    out = pl.pallas_call(
        _mlp_decoder_kernel,
        out_shape=jax.ShapeDtypeStruct((m_pad, d_out_p), jnp.float32),
        grid=(m_pad // tm,),
        in_specs=[
            pl.BlockSpec((tm, d_in_p), lambda i: (i, 0)),            # x rows
            pl.BlockSpec((d_in_p, hidden), lambda i: (0, 0)),        # w_in
            pl.BlockSpec((1, hidden), lambda i: (0, 0)),             # b_in
            pl.BlockSpec((3, 1, hidden), lambda i: (0, 0, 0)),       # LN gamma
            pl.BlockSpec((3, 1, hidden), lambda i: (0, 0, 0)),       # LN beta
            pl.BlockSpec((3, hidden, hidden), lambda i: (0, 0, 0)),  # hidden W
            pl.BlockSpec((3, 1, hidden), lambda i: (0, 0, 0)),       # hidden b
            pl.BlockSpec((hidden, d_out_p), lambda i: (0, 0)),       # w_out
            pl.BlockSpec((1, d_out_p), lambda i: (0, 0)),            # b_out
        ],
        out_specs=pl.BlockSpec((tm, d_out_p), lambda i: (i, 0)),
        compiler_params=pltpu.CompilerParams(
            dimension_semantics=("parallel",),
            vmem_limit_bytes=_vmem_limit_bytes(tm, d_in_p, hidden, d_out_p)),
    )(x2, w_in_p, b_in, ln_g, ln_b, w_h_b, b_h, w_out_p, b_out_p)
    return out[:m, :d_out].reshape(B, S, d_out)


# --------------------------- parameter handling ----------------------------- #

def init_params(key, input_dim, hidden_dim, output_dim):
    """PyTorch-default init; Linear weights stored transposed as (in, out)."""
    def linear_init(k, fan_in, fan_out):
        kw, kb = jax.random.split(k)
        bound = 1.0 / float(np.sqrt(fan_in))
        w = jax.random.uniform(kw, (fan_in, fan_out), jnp.float32, -bound, bound)
        b = jax.random.uniform(kb, (1, fan_out), jnp.float32, -bound, bound)
        return w, b

    k_in, k1, k2, k3, k_out = jax.random.split(key, 5)
    w_in, b_in = linear_init(k_in, input_dim, hidden_dim)
    whs, bhs = [], []
    for k in (k1, k2, k3):
        w, b = linear_init(k, hidden_dim, hidden_dim)
        whs.append(w)
        bhs.append(b)
    w_out, b_out = linear_init(k_out, hidden_dim, output_dim)
    return {
        "w_in": w_in, "b_in": b_in,
        "ln_g": jnp.ones((3, 1, hidden_dim), jnp.float32),   # LayerNorm weight=1
        "ln_b": jnp.zeros((3, 1, hidden_dim), jnp.float32),  # LayerNorm bias=0
        "w_h": jnp.stack(whs), "b_h": jnp.stack(bhs),
        "w_out": w_out, "b_out": b_out,
    }


def _reference_forward(x, params):
    """Pure-JAX f32 reference (same math as the PyTorch module)."""
    h = x.astype(jnp.float32) @ params["w_in"] + params["b_in"]
    h = jax.nn.gelu(h, approximate=False)
    for i in range(3):
        mu = jnp.mean(h, axis=-1, keepdims=True)
        var = jnp.mean(jnp.square(h - mu), axis=-1, keepdims=True)
        h = (h - mu) / jnp.sqrt(var + _LN_EPS) * params["ln_g"][i] + params["ln_b"][i]
        h = h @ params["w_h"][i] + params["b_h"][i]
        h = jax.nn.gelu(h, approximate=False)
    return h @ params["w_out"] + params["b_out"]


if __name__ == "__main__":
    key = jax.random.PRNGKey(0)
    batch, input_dim, hidden_dim, output_dim = 4, 48, 128, 24
    kp, kx = jax.random.split(key)
    params = init_params(kp, input_dim, hidden_dim, output_dim)
    x = jax.random.normal(kx, (batch, 1, input_dim), jnp.float32)

    out = mlp_decoder_forward(x, params)
    jax.block_until_ready(out)
    assert out.shape == (batch, 1, output_dim)

    ref = _reference_forward(x, params)
    # Tolerance loosened vs. the pure-f32 version: matmul operands are bf16
    # (MXU native) with f32 accumulation.
    np.testing.assert_allclose(np.asarray(out), np.asarray(ref),
                               rtol=2e-2, atol=2e-2)
    print("KERNEL_OK")
</pallas_src>

<mosaic_0001>
module attributes {stable_mosaic.version = 11 : i64} {
  func.func @_mlp_decoder_kernel(%arg0: i32, %arg1: memref<8x128xbf16, #tpu.memory_space<vmem>>, %arg2: memref<128x128xbf16, #tpu.memory_space<vmem>>, %arg3: memref<1x128xf32, #tpu.memory_space<vmem>>, %arg4: memref<3x1x128xf32, #tpu.memory_space<vmem>>, %arg5: memref<3x1x128xf32, #tpu.memory_space<vmem>>, %arg6: memref<3x128x128xbf16, #tpu.memory_space<vmem>>, %arg7: memref<3x1x128xf32, #tpu.memory_space<vmem>>, %arg8: memref<128x128xbf16, #tpu.memory_space<vmem>>, %arg9: memref<1x128xf32, #tpu.memory_space<vmem>>, %arg10: memref<8x128xf32, #tpu.memory_space<vmem>>) attributes {dimension_semantics = [#tpu.dimension_semantics<parallel>], iteration_bounds = array<i64: 1>, scalar_prefetch = 0 : i64, scratch_operands = 0 : i64, tpu.core_type = #tpu.core_type<tc>, window_params = [{transform_indices = @transform_0, window_bounds = array<i64: 8, 128>}, {pipeline_mode = #tpu.pipeline_mode<synchronous>, transform_indices = @transform_1, window_bounds = array<i64: 128, 128>}, {pipeline_mode = #tpu.pipeline_mode<synchronous>, transform_indices = @transform_2, window_bounds = array<i64: 1, 128>}, {pipeline_mode = #tpu.pipeline_mode<synchronous>, transform_indices = @transform_3, window_bounds = array<i64: 3, 1, 128>}, {pipeline_mode = #tpu.pipeline_mode<synchronous>, transform_indices = @transform_4, window_bounds = array<i64: 3, 1, 128>}, {pipeline_mode = #tpu.pipeline_mode<synchronous>, transform_indices = @transform_5, window_bounds = array<i64: 3, 128, 128>}, {pipeline_mode = #tpu.pipeline_mode<synchronous>, transform_indices = @transform_6, window_bounds = array<i64: 3, 1, 128>}, {pipeline_mode = #tpu.pipeline_mode<synchronous>, transform_indices = @transform_7, window_bounds = array<i64: 128, 128>}, {pipeline_mode = #tpu.pipeline_mode<synchronous>, transform_indices = @transform_8, window_bounds = array<i64: 1, 128>}, {transform_indices = @transform_9, window_bounds = array<i64: 8, 128>}]} {
    %c0 = arith.constant 0 : index
    %c0_0 = arith.constant 0 : index
    %0 = vector.load %arg1[%c0, %c0_0] : memref<8x128xbf16, #tpu.memory_space<vmem>>, vector<8x128xbf16>
    %c0_1 = arith.constant 0 : index
    %c0_2 = arith.constant 0 : index
    %1 = vector.load %arg2[%c0_1, %c0_2] : memref<128x128xbf16, #tpu.memory_space<vmem>>, vector<128x128xbf16>
    %cst = arith.constant dense<0.000000e+00> : vector<8x128xf32>
    %2 = tpu.matmul %0, %1, %cst {dimension_numbers = #tpu.dot_dimension_numbers<[1], [0], [0], [1], [0, 0, 1, 1], [], []>} : vector<8x128xbf16>, vector<128x128xbf16>, vector<8x128xf32> -> vector<8x128xf32>
    %c0_3 = arith.constant 0 : index
    %c0_4 = arith.constant 0 : index
    %3 = vector.load %arg3[%c0_3, %c0_4] : memref<1x128xf32, #tpu.memory_space<vmem>>, vector<1x128xf32>
    %4 = vector.broadcast %3 : vector<1x128xf32> to vector<8x128xf32>
    %5 = arith.addf %2, %4 : vector<8x128xf32>
    %cst_5 = arith.constant 5.000000e-01 : f32
    %6 = vector.broadcast %cst_5 : f32 to vector<8x128xf32>
    %7 = arith.mulf %6, %5 : vector<8x128xf32>
    %cst_6 = arith.constant 0.707106769 : f32
    %8 = vector.broadcast %cst_6 : f32 to vector<8x128xf32>
    %9 = arith.mulf %5, %8 : vector<8x128xf32>
    %10 = math.absf %9 : vector<8x128xf32>
    %cst_7 = arith.constant 0.327591091 : f32
    %11 = vector.broadcast %cst_7 : f32 to vector<8x128xf32>
    %12 = arith.mulf %11, %10 : vector<8x128xf32>
    %cst_8 = arith.constant 1.000000e+00 : f32
    %13 = vector.broadcast %cst_8 : f32 to vector<8x128xf32>
    %14 = arith.addf %13, %12 : vector<8x128xf32>
    %15 = tpu.reciprocal %14 {approx = true} : vector<8x128xf32> -> vector<8x128xf32>
    %cst_9 = arith.constant 1.06140542 : f32
    %16 = vector.broadcast %cst_9 : f32 to vector<8x128xf32>
    %17 = arith.mulf %16, %15 : vector<8x128xf32>
    %cst_10 = arith.constant -1.45315206 : f32
    %18 = vector.broadcast %cst_10 : f32 to vector<8x128xf32>
    %19 = arith.addf %17, %18 : vector<8x128xf32>
    %20 = arith.mulf %19, %15 : vector<8x128xf32>
    %cst_11 = arith.constant 1.42141378 : f32
    %21 = vector.broadcast %cst_11 : f32 to vector<8x128xf32>
    %22 = arith.addf %20, %21 : vector<8x128xf32>
    %23 = arith.mulf %22, %15 : vector<8x128xf32>
    %cst_12 = arith.constant -0.284496725 : f32
    %24 = vector.broadcast %cst_12 : f32 to vector<8x128xf32>
    %25 = arith.addf %23, %24 : vector<8x128xf32>
    %26 = arith.mulf %25, %15 : vector<8x128xf32>
    %cst_13 = arith.constant 0.254829586 : f32
    %27 = vector.broadcast %cst_13 : f32 to vector<8x128xf32>
    %28 = arith.addf %26, %27 : vector<8x128xf32>
    %29 = arith.mulf %28, %15 : vector<8x128xf32>
    %cst_14 = arith.constant 0.000000e+00 : f32
    %30 = vector.broadcast %cst_14 : f32 to vector<8x128xf32>
    %31 = arith.subf %30, %10 : vector<8x128xf32>
    %32 = arith.mulf %31, %10 : vector<8x128xf32>
    %33 = math.exp %32 : vector<8x128xf32>
    %34 = arith.mulf %29, %33 : vector<8x128xf32>
    %cst_15 = arith.constant 1.000000e+00 : f32
    %35 = vector.broadcast %cst_15 : f32 to vector<8x128xf32>
    %36 = arith.subf %35, %34 : vector<8x128xf32>
    %cst_16 = arith.constant 0.000000e+00 : f32
    %37 = vector.broadcast %cst_16 : f32 to vector<8x128xf32>
    %38 = arith.cmpf oge, %9, %37 : vector<8x128xf32>
    %cst_17 = arith.constant 0.000000e+00 : f32
    %39 = vector.broadcast %cst_17 : f32 to vector<8x128xf32>
    %40 = arith.subf %39, %36 : vector<8x128xf32>
    %41 = arith.select %38, %36, %40 : vector<8x128xi1>, vector<8x128xf32>
    %cst_18 = arith.constant 1.000000e+00 : f32
    %42 = vector.broadcast %cst_18 : f32 to vector<8x128xf32>
    %43 = arith.addf %42, %41 : vector<8x128xf32>
    %44 = arith.mulf %7, %43 : vector<8x128xf32>
    %c0_19 = arith.constant 0 : index
    %c0_20 = arith.constant 0 : index
    %c0_21 = arith.constant 0 : index
    %45 = vector.load %arg4[%c0_19, %c0_20, %c0_21] : memref<3x1x128xf32, #tpu.memory_space<vmem>>, vector<1x1x128xf32>
    %46 = vector.shape_cast %45 : vector<1x1x128xf32> to vector<1x128xf32>
    %c0_22 = arith.constant 0 : index
    %c0_23 = arith.constant 0 : index
    %c0_24 = arith.constant 0 : index
    %47 = vector.load %arg5[%c0_22, %c0_23, %c0_24] : memref<3x1x128xf32, #tpu.memory_space<vmem>>, vector<1x1x128xf32>
    %48 = vector.shape_cast %47 : vector<1x1x128xf32> to vector<1x128xf32>
    %cst_25 = arith.constant dense<0.000000e+00> : vector<8xf32>
    %49 = vector.multi_reduction <add>, %44, %cst_25 [1] : vector<8x128xf32> to vector<8xf32>
    %50 = vector.shape_cast %49 : vector<8xf32> to vector<8x1xf32>
    %cst_26 = arith.constant 1.280000e+02 : f32
    %51 = vector.broadcast %cst_26 : f32 to vector<8x1xf32>
    %52 = arith.divf %50, %51 : vector<8x1xf32>
    %53 = vector.broadcast %52 : vector<8x1xf32> to vector<8x128xf32>
    %54 = arith.subf %44, %53 : vector<8x128xf32>
    %55 = arith.mulf %54, %54 : vector<8x128xf32>
    %cst_27 = arith.constant dense<0.000000e+00> : vector<8xf32>
    %56 = vector.multi_reduction <add>, %55, %cst_27 [1] : vector<8x128xf32> to vector<8xf32>
    %57 = vector.shape_cast %56 : vector<8xf32> to vector<8x1xf32>
    %cst_28 = arith.constant 1.280000e+02 : f32
    %58 = vector.broadcast %cst_28 : f32 to vector<8x1xf32>
    %59 = arith.divf %57, %58 : vector<8x1xf32>
    %60 = vector.broadcast %52 : vector<8x1xf32> to vector<8x128xf32>
    %61 = arith.subf %44, %60 : vector<8x128xf32>
    %cst_29 = arith.constant 9.99999974E-6 : f32
    %62 = vector.broadcast %cst_29 : f32 to vector<8x1xf32>
    %63 = arith.addf %59, %62 : vector<8x1xf32>
    %64 = math.rsqrt %63 : vector<8x1xf32>
    %65 = vector.broadcast %64 : vector<8x1xf32> to vector<8x128xf32>
    %66 = arith.mulf %61, %65 : vector<8x128xf32>
    %67 = vector.broadcast %46 : vector<1x128xf32> to vector<8x128xf32>
    %68 = arith.mulf %66, %67 : vector<8x128xf32>
    %69 = vector.broadcast %48 : vector<1x128xf32> to vector<8x128xf32>
    %70 = arith.addf %68, %69 : vector<8x128xf32>
    %71 = arith.truncf %70 : vector<8x128xf32> to vector<8x128xbf16>
    %c0_30 = arith.constant 0 : index
    %c0_31 = arith.constant 0 : index
    %c0_32 = arith.constant 0 : index
    %72 = vector.load %arg6[%c0_30, %c0_31, %c0_32] : memref<3x128x128xbf16, #tpu.memory_space<vmem>>, vector<1x128x128xbf16>
    %73 = vector.shape_cast %72 : vector<1x128x128xbf16> to vector<128x128xbf16>
    %cst_33 = arith.constant dense<0.000000e+00> : vector<8x128xf32>
    %74 = tpu.matmul %71, %73, %cst_33 {dimension_numbers = #tpu.dot_dimension_numbers<[1], [0], [0], [1], [0, 0, 1, 1], [], []>} : vector<8x128xbf16>, vector<128x128xbf16>, vector<8x128xf32> -> vector<8x128xf32>
    %c0_34 = arith.constant 0 : index
    %c0_35 = arith.constant 0 : index
    %c0_36 = arith.constant 0 : index
    %75 = vector.load %arg7[%c0_34, %c0_35, %c0_36] : memref<3x1x128xf32, #tpu.memory_space<vmem>>, vector<1x1x128xf32>
    %76 = vector.shape_cast %75 : vector<1x1x128xf32> to vector<1x128xf32>
    %77 = vector.broadcast %76 : vector<1x128xf32> to vector<8x128xf32>
    %78 = arith.addf %74, %77 : vector<8x128xf32>
    %cst_37 = arith.constant 5.000000e-01 : f32
    %79 = vector.broadcast %cst_37 : f32 to vector<8x128xf32>
    %80 = arith.mulf %79, %78 : vector<8x128xf32>
    %cst_38 = arith.constant 0.707106769 : f32
    %81 = vector.broadcast %cst_38 : f32 to vector<8x128xf32>
    %82 = arith.mulf %78, %81 : vector<8x128xf32>
    %83 = math.absf %82 : vector<8x128xf32>
    %cst_39 = arith.constant 0.327591091 : f32
    %84 = vector.broadcast %cst_39 : f32 to vector<8x128xf32>
    %85 = arith.mulf %84, %83 : vector<8x128xf32>
    %cst_40 = arith.constant 1.000000e+00 : f32
    %86 = vector.broadcast %cst_40 : f32 to vector<8x128xf32>
    %87 = arith.addf %86, %85 : vector<8x128xf32>
    %88 = tpu.reciprocal %87 {approx = true} : vector<8x128xf32> -> vector<8x128xf32>
    %cst_41 = arith.constant 1.06140542 : f32
    %89 = vector.broadcast %cst_41 : f32 to vector<8x128xf32>
    %90 = arith.mulf %89, %88 : vector<8x128xf32>
    %cst_42 = arith.constant -1.45315206 : f32
    %91 = vector.broadcast %cst_42 : f32 to vector<8x128xf32>
    %92 = arith.addf %90, %91 : vector<8x128xf32>
    %93 = arith.mulf %92, %88 : vector<8x128xf32>
    %cst_43 = arith.constant 1.42141378 : f32
    %94 = vector.broadcast %cst_43 : f32 to vector<8x128xf32>
    %95 = arith.addf %93, %94 : vector<8x128xf32>
    %96 = arith.mulf %95, %88 : vector<8x128xf32>
    %cst_44 = arith.constant -0.284496725 : f32
    %97 = vector.broadcast %cst_44 : f32 to vector<8x128xf32>
    %98 = arith.addf %96, %97 : vector<8x128xf32>
    %99 = arith.mulf %98, %88 : vector<8x128xf32>
    %cst_45 = arith.constant 0.254829586 : f32
    %100 = vector.broadcast %cst_45 : f32 to vector<8x128xf32>
    %101 = arith.addf %99, %100 : vector<8x128xf32>
    %102 = arith.mulf %101, %88 : vector<8x128xf32>
    %cst_46 = arith.constant 0.000000e+00 : f32
    %103 = vector.broadcast %cst_46 : f32 to vector<8x128xf32>
    %104 = arith.subf %103, %83 : vector<8x128xf32>
    %105 = arith.mulf %104, %83 : vector<8x128xf32>
    %106 = math.exp %105 : vector<8x128xf32>
    %107 = arith.mulf %102, %106 : vector<8x128xf32>
    %cst_47 = arith.constant 1.000000e+00 : f32
    %108 = vector.broadcast %cst_47 : f32 to vector<8x128xf32>
    %109 = arith.subf %108, %107 : vector<8x128xf32>
    %cst_48 = arith.constant 0.000000e+00 : f32
    %110 = vector.broadcast %cst_48 : f32 to vector<8x128xf32>
    %111 = arith.cmpf oge, %82, %110 : vector<8x128xf32>
    %cst_49 = arith.constant 0.000000e+00 : f32
    %112 = vector.broadcast %cst_49 : f32 to vector<8x128xf32>
    %113 = arith.subf %112, %109 : vector<8x128xf32>
    %114 = arith.select %111, %109, %113 : vector<8x128xi1>, vector<8x128xf32>
    %cst_50 = arith.constant 1.000000e+00 : f32
    %115 = vector.broadcast %cst_50 : f32 to vector<8x128xf32>
    %116 = arith.addf %115, %114 : vector<8x128xf32>
    %117 = arith.mulf %80, %116 : vector<8x128xf32>
    %c1 = arith.constant 1 : index
    %c0_51 = arith.constant 0 : index
    %c0_52 = arith.constant 0 : index
    %118 = vector.load %arg4[%c1, %c0_51, %c0_52] : memref<3x1x128xf32, #tpu.memory_space<vmem>>, vector<1x1x128xf32>
    %119 = vector.shape_cast %118 : vector<1x1x128xf32> to vector<1x128xf32>
    %c1_53 = arith.constant 1 : index
    %c0_54 = arith.constant 0 : index
    %c0_55 = arith.constant 0 : index
    %120 = vector.load %arg5[%c1_53, %c0_54, %c0_55] : memref<3x1x128xf32, #tpu.memory_space<vmem>>, vector<1x1x128xf32>
    %121 = vector.shape_cast %120 : vector<1x1x128xf32> to vector<1x128xf32>
    %cst_56 = arith.constant dense<0.000000e+00> : vector<8xf32>
    %122 = vector.multi_reduction <add>, %117, %cst_56 [1] : vector<8x128xf32> to vector<8xf32>
    %123 = vector.shape_cast %122 : vector<8xf32> to vector<8x1xf32>
    %cst_57 = arith.constant 1.280000e+02 : f32
    %124 = vector.broadcast %cst_57 : f32 to vector<8x1xf32>
    %125 = arith.divf %123, %124 : vector<8x1xf32>
    %126 = vector.broadcast %125 : vector<8x1xf32> to vector<8x128xf32>
    %127 = arith.subf %117, %126 : vector<8x128xf32>
    %128 = arith.mulf %127, %127 : vector<8x128xf32>
    %cst_58 = arith.constant dense<0.000000e+00> : vector<8xf32>
    %129 = vector.multi_reduction <add>, %128, %cst_58 [1] : vector<8x128xf32> to vector<8xf32>
    %130 = vector.shape_cast %129 : vector<8xf32> to vector<8x1xf32>
    %cst_59 = arith.constant 1.280000e+02 : f32
    %131 = vector.broadcast %cst_59 : f32 to vector<8x1xf32>
    %132 = arith.divf %130, %131 : vector<8x1xf32>
    %133 = vector.broadcast %125 : vector<8x1xf32> to vector<8x128xf32>
    %134 = arith.subf %117, %133 : vector<8x128xf32>
    %cst_60 = arith.constant 9.99999974E-6 : f32
    %135 = vector.broadcast %cst_60 : f32 to vector<8x1xf32>
    %136 = arith.addf %132, %135 : vector<8x1xf32>
    %137 = math.rsqrt %136 : vector<8x1xf32>
    %138 = vector.broadcast %137 : vector<8x1xf32> to vector<8x128xf32>
    %139 = arith.mulf %134, %138 : vector<8x128xf32>
    %140 = vector.broadcast %119 : vector<1x128xf32> to vector<8x128xf32>
    %141 = arith.mulf %139, %140 : vector<8x128xf32>
    %142 = vector.broadcast %121 : vector<1x128xf32> to vector<8x128xf32>
    %143 = arith.addf %141, %142 : vector<8x128xf32>
    %144 = arith.truncf %143 : vector<8x128xf32> to vector<8x128xbf16>
    %c1_61 = arith.constant 1 : index
    %c0_62 = arith.constant 0 : index
    %c0_63 = arith.constant 0 : index
    %145 = vector.load %arg6[%c1_61, %c0_62, %c0_63] : memref<3x128x128xbf16, #tpu.memory_space<vmem>>, vector<1x128x128xbf16>
    %146 = vector.shape_cast %145 : vector<1x128x128xbf16> to vector<128x128xbf16>
    %cst_64 = arith.constant dense<0.000000e+00> : vector<8x128xf32>
    %147 = tpu.matmul %144, %146, %cst_64 {dimension_numbers = #tpu.dot_dimension_numbers<[1], [0], [0], [1], [0, 0, 1, 1], [], []>} : vector<8x128xbf16>, vector<128x128xbf16>, vector<8x128xf32> -> vector<8x128xf32>
    %c1_65 = arith.constant 1 : index
    %c0_66 = arith.constant 0 : index
    %c0_67 = arith.constant 0 : index
    %148 = vector.load %arg7[%c1_65, %c0_66, %c0_67] : memref<3x1x128xf32, #tpu.memory_space<vmem>>, vector<1x1x128xf32>
    %149 = vector.shape_cast %148 : vector<1x1x128xf32> to vector<1x128xf32>
    %150 = vector.broadcast %149 : vector<1x128xf32> to vector<8x128xf32>
    %151 = arith.addf %147, %150 : vector<8x128xf32>
    %cst_68 = arith.constant 5.000000e-01 : f32
    %152 = vector.broadcast %cst_68 : f32 to vector<8x128xf32>
    %153 = arith.mulf %152, %151 : vector<8x128xf32>
    %cst_69 = arith.constant 0.707106769 : f32
    %154 = vector.broadcast %cst_69 : f32 to vector<8x128xf32>
    %155 = arith.mulf %151, %154 : vector<8x128xf32>
    %156 = math.absf %155 : vector<8x128xf32>
    %cst_70 = arith.constant 0.327591091 : f32
    %157 = vector.broadcast %cst_70 : f32 to vector<8x128xf32>
    %158 = arith.mulf %157, %156 : vector<8x128xf32>
    %cst_71 = arith.constant 1.000000e+00 : f32
    %159 = vector.broadcast %cst_71 : f32 to vector<8x128xf32>
    %160 = arith.addf %159, %158 : vector<8x128xf32>
    %161 = tpu.reciprocal %160 {approx = true} : vector<8x128xf32> -> vector<8x128xf32>
    %cst_72 = arith.constant 1.06140542 : f32
    %162 = vector.broadcast %cst_72 : f32 to vector<8x128xf32>
    %163 = arith.mulf %162, %161 : vector<8x128xf32>
    %cst_73 = arith.constant -1.45315206 : f32
    %164 = vector.broadcast %cst_73 : f32 to vector<8x128xf32>
    %165 = arith.addf %163, %164 : vector<8x128xf32>
    %166 = arith.mulf %165, %161 : vector<8x128xf32>
    %cst_74 = arith.constant 1.42141378 : f32
    %167 = vector.broadcast %cst_74 : f32 to vector<8x128xf32>
    %168 = arith.addf %166, %167 : vector<8x128xf32>
    %169 = arith.mulf %168, %161 : vector<8x128xf32>
    %cst_75 = arith.constant -0.284496725 : f32
    %170 = vector.broadcast %cst_75 : f32 to vector<8x128xf32>
    %171 = arith.addf %169, %170 : vector<8x128xf32>
    %172 = arith.mulf %171, %161 : vector<8x128xf32>
    %cst_76 = arith.constant 0.254829586 : f32
    %173 = vector.broadcast %cst_76 : f32 to vector<8x128xf32>
    %174 = arith.addf %172, %173 : vector<8x128xf32>
    %175 = arith.mulf %174, %161 : vector<8x128xf32>
    %cst_77 = arith.constant 0.000000e+00 : f32
    %176 = vector.broadcast %cst_77 : f32 to vector<8x128xf32>
    %177 = arith.subf %176, %156 : vector<8x128xf32>
    %178 = arith.mulf %177, %156 : vector<8x128xf32>
    %179 = math.exp %178 : vector<8x128xf32>
    %180 = arith.mulf %175, %179 : vector<8x128xf32>
    %cst_78 = arith.constant 1.000000e+00 : f32
    %181 = vector.broadcast %cst_78 : f32 to vector<8x128xf32>
    %182 = arith.subf %181, %180 : vector<8x128xf32>
    %cst_79 = arith.constant 0.000000e+00 : f32
    %183 = vector.broadcast %cst_79 : f32 to vector<8x128xf32>
    %184 = arith.cmpf oge, %155, %183 : vector<8x128xf32>
    %cst_80 = arith.constant 0.000000e+00 : f32
    %185 = vector.broadcast %cst_80 : f32 to vector<8x128xf32>
    %186 = arith.subf %185, %182 : vector<8x128xf32>
    %187 = arith.select %184, %182, %186 : vector<8x128xi1>, vector<8x128xf32>
    %cst_81 = arith.constant 1.000000e+00 : f32
    %188 = vector.broadcast %cst_81 : f32 to vector<8x128xf32>
    %189 = arith.addf %188, %187 : vector<8x128xf32>
    %190 = arith.mulf %153, %189 : vector<8x128xf32>
    %c2 = arith.constant 2 : index
    %c0_82 = arith.constant 0 : index
    %c0_83 = arith.constant 0 : index
    %191 = vector.load %arg4[%c2, %c0_82, %c0_83] : memref<3x1x128xf32, #tpu.memory_space<vmem>>, vector<1x1x128xf32>
    %192 = vector.shape_cast %191 : vector<1x1x128xf32> to vector<1x128xf32>
    %c2_84 = arith.constant 2 : index
    %c0_85 = arith.constant 0 : index
    %c0_86 = arith.constant 0 : index
    %193 = vector.load %arg5[%c2_84, %c0_85, %c0_86] : memref<3x1x128xf32, #tpu.memory_space<vmem>>, vector<1x1x128xf32>
    %194 = vector.shape_cast %193 : vector<1x1x128xf32> to vector<1x128xf32>
    %cst_87 = arith.constant dense<0.000000e+00> : vector<8xf32>
    %195 = vector.multi_reduction <add>, %190, %cst_87 [1] : vector<8x128xf32> to vector<8xf32>
    %196 = vector.shape_cast %195 : vector<8xf32> to vector<8x1xf32>
    %cst_88 = arith.constant 1.280000e+02 : f32
    %197 = vector.broadcast %cst_88 : f32 to vector<8x1xf32>
    %198 = arith.divf %196, %197 : vector<8x1xf32>
    %199 = vector.broadcast %198 : vector<8x1xf32> to vector<8x128xf32>
    %200 = arith.subf %190, %199 : vector<8x128xf32>
    %201 = arith.mulf %200, %200 : vector<8x128xf32>
    %cst_89 = arith.constant dense<0.000000e+00> : vector<8xf32>
    %202 = vector.multi_reduction <add>, %201, %cst_89 [1] : vector<8x128xf32> to vector<8xf32>
    %203 = vector.shape_cast %202 : vector<8xf32> to vector<8x1xf32>
    %cst_90 = arith.constant 1.280000e+02 : f32
    %204 = vector.broadcast %cst_90 : f32 to vector<8x1xf32>
    %205 = arith.divf %203, %204 : vector<8x1xf32>
    %206 = vector.broadcast %198 : vector<8x1xf32> to vector<8x128xf32>
    %207 = arith.subf %190, %206 : vector<8x128xf32>
    %cst_91 = arith.constant 9.99999974E-6 : f32
    %208 = vector.broadcast %cst_91 : f32 to vector<8x1xf32>
    %209 = arith.addf %205, %208 : vector<8x1xf32>
    %210 = math.rsqrt %209 : vector<8x1xf32>
    %211 = vector.broadcast %210 : vector<8x1xf32> to vector<8x128xf32>
    %212 = arith.mulf %207, %211 : vector<8x128xf32>
    %213 = vector.broadcast %192 : vector<1x128xf32> to vector<8x128xf32>
    %214 = arith.mulf %212, %213 : vector<8x128xf32>
    %215 = vector.broadcast %194 : vector<1x128xf32> to vector<8x128xf32>
    %216 = arith.addf %214, %215 : vector<8x128xf32>
    %217 = arith.truncf %216 : vector<8x128xf32> to vector<8x128xbf16>
    %c2_92 = arith.constant 2 : index
    %c0_93 = arith.constant 0 : index
    %c0_94 = arith.constant 0 : index
    %218 = vector.load %arg6[%c2_92, %c0_93, %c0_94] : memref<3x128x128xbf16, #tpu.memory_space<vmem>>, vector<1x128x128xbf16>
    %219 = vector.shape_cast %218 : vector<1x128x128xbf16> to vector<128x128xbf16>
    %cst_95 = arith.constant dense<0.000000e+00> : vector<8x128xf32>
    %220 = tpu.matmul %217, %219, %cst_95 {dimension_numbers = #tpu.dot_dimension_numbers<[1], [0], [0], [1], [0, 0, 1, 1], [], []>} : vector<8x128xbf16>, vector<128x128xbf16>, vector<8x128xf32> -> vector<8x128xf32>
    %c2_96 = arith.constant 2 : index
    %c0_97 = arith.constant 0 : index
    %c0_98 = arith.constant 0 : index
    %221 = vector.load %arg7[%c2_96, %c0_97, %c0_98] : memref<3x1x128xf32, #tpu.memory_space<vmem>>, vector<1x1x128xf32>
    %222 = vector.shape_cast %221 : vector<1x1x128xf32> to vector<1x128xf32>
    %223 = vector.broadcast %222 : vector<1x128xf32> to vector<8x128xf32>
    %224 = arith.addf %220, %223 : vector<8x128xf32>
    %cst_99 = arith.constant 5.000000e-01 : f32
    %225 = vector.broadcast %cst_99 : f32 to vector<8x128xf32>
    %226 = arith.mulf %225, %224 : vector<8x128xf32>
    %cst_100 = arith.constant 0.707106769 : f32
    %227 = vector.broadcast %cst_100 : f32 to vector<8x128xf32>
    %228 = arith.mulf %224, %227 : vector<8x128xf32>
    %229 = math.absf %228 : vector<8x128xf32>
    %cst_101 = arith.constant 0.327591091 : f32
    %230 = vector.broadcast %cst_101 : f32 to vector<8x128xf32>
    %231 = arith.mulf %230, %229 : vector<8x128xf32>
    %cst_102 = arith.constant 1.000000e+00 : f32
    %232 = vector.broadcast %cst_102 : f32 to vector<8x128xf32>
    %233 = arith.addf %232, %231 : vector<8x128xf32>
    %234 = tpu.reciprocal %233 {approx = true} : vector<8x128xf32> -> vector<8x128xf32>
    %cst_103 = arith.constant 1.06140542 : f32
    %235 = vector.broadcast %cst_103 : f32 to vector<8x128xf32>
    %236 = arith.mulf %235, %234 : vector<8x128xf32>
    %cst_104 = arith.constant -1.45315206 : f32
    %237 = vector.broadcast %cst_104 : f32 to vector<8x128xf32>
    %238 = arith.addf %236, %237 : vector<8x128xf32>
    %239 = arith.mulf %238, %234 : vector<8x128xf32>
    %cst_105 = arith.constant 1.42141378 : f32
    %240 = vector.broadcast %cst_105 : f32 to vector<8x128xf32>
    %241 = arith.addf %239, %240 : vector<8x128xf32>
    %242 = arith.mulf %241, %234 : vector<8x128xf32>
    %cst_106 = arith.constant -0.284496725 : f32
    %243 = vector.broadcast %cst_106 : f32 to vector<8x128xf32>
    %244 = arith.addf %242, %243 : vector<8x128xf32>
    %245 = arith.mulf %244, %234 : vector<8x128xf32>
    %cst_107 = arith.constant 0.254829586 : f32
    %246 = vector.broadcast %cst_107 : f32 to vector<8x128xf32>
    %247 = arith.addf %245, %246 : vector<8x128xf32>
    %248 = arith.mulf %247, %234 : vector<8x128xf32>
    %cst_108 = arith.constant 0.000000e+00 : f32
    %249 = vector.broadcast %cst_108 : f32 to vector<8x128xf32>
    %250 = arith.subf %249, %229 : vector<8x128xf32>
    %251 = arith.mulf %250, %229 : vector<8x128xf32>
    %252 = math.exp %251 : vector<8x128xf32>
    %253 = arith.mulf %248, %252 : vector<8x128xf32>
    %cst_109 = arith.constant 1.000000e+00 : f32
    %254 = vector.broadcast %cst_109 : f32 to vector<8x128xf32>
    %255 = arith.subf %254, %253 : vector<8x128xf32>
    %cst_110 = arith.constant 0.000000e+00 : f32
    %256 = vector.broadcast %cst_110 : f32 to vector<8x128xf32>
    %257 = arith.cmpf oge, %228, %256 : vector<8x128xf32>
    %cst_111 = arith.constant 0.000000e+00 : f32
    %258 = vector.broadcast %cst_111 : f32 to vector<8x128xf32>
    %259 = arith.subf %258, %255 : vector<8x128xf32>
    %260 = arith.select %257, %255, %259 : vector<8x128xi1>, vector<8x128xf32>
    %cst_112 = arith.constant 1.000000e+00 : f32
    %261 = vector.broadcast %cst_112 : f32 to vector<8x128xf32>
    %262 = arith.addf %261, %260 : vector<8x128xf32>
    %263 = arith.mulf %226, %262 : vector<8x128xf32>
    %264 = arith.truncf %263 : vector<8x128xf32> to vector<8x128xbf16>
    %c0_113 = arith.constant 0 : index
    %c0_114 = arith.constant 0 : index
    %265 = vector.load %arg8[%c0_113, %c0_114] : memref<128x128xbf16, #tpu.memory_space<vmem>>, vector<128x128xbf16>
    %cst_115 = arith.constant dense<0.000000e+00> : vector<8x128xf32>
    %266 = tpu.matmul %264, %265, %cst_115 {dimension_numbers = #tpu.dot_dimension_numbers<[1], [0], [0], [1], [0, 0, 1, 1], [], []>} : vector<8x128xbf16>, vector<128x128xbf16>, vector<8x128xf32> -> vector<8x128xf32>
    %c0_116 = arith.constant 0 : index
    %c0_117 = arith.constant 0 : index
    %267 = vector.load %arg9[%c0_116, %c0_117] : memref<1x128xf32, #tpu.memory_space<vmem>>, vector<1x128xf32>
    %268 = vector.broadcast %267 : vector<1x128xf32> to vector<8x128xf32>
    %269 = arith.addf %266, %268 : vector<8x128xf32>
    %c0_118 = arith.constant 0 : index
    %c0_119 = arith.constant 0 : index
    %270 = vector.load %arg10[%c0_118, %c0_119] : memref<8x128xf32, #tpu.memory_space<vmem>>, vector<8x128xf32>
    tpu.vector_store %arg10[%c0_118, %c0_119], %269 {strides = array<i32>} : memref<8x128xf32, #tpu.memory_space<vmem>>, vector<8x128xf32>,
    return
  }
  func.func @transform_0(%arg0: i32) -> (i32, i32) {
    %c0_i32 = arith.constant 0 : i32
    %c0_i32_0 = arith.constant 0 : i32
    return %arg0, %c0_i32 : i32, i32
  }
  func.func @transform_1(%arg0: i32) -> (i32, i32) {
    %c0_i32 = arith.constant 0 : i32
    %c0_i32_0 = arith.constant 0 : i32
    %c0_i32_1 = arith.constant 0 : i32
    return %c0_i32, %c0_i32_0 : i32, i32
  }
  func.func @transform_2(%arg0: i32) -> (i32, i32) {
    %c0_i32 = arith.constant 0 : i32
    %c0_i32_0 = arith.constant 0 : i32
    %c0_i32_1 = arith.constant 0 : i32
    return %c0_i32, %c0_i32_0 : i32, i32
  }
  func.func @transform_3(%arg0: i32) -> (i32, i32, i32) {
    %c0_i32 = arith.constant 0 : i32
    %c0_i32_0 = arith.constant 0 : i32
    %c0_i32_1 = arith.constant 0 : i32
    %c0_i32_2 = arith.constant 0 : i32
    return %c0_i32, %c0_i32_0, %c0_i32_1 : i32, i32, i32
  }
  func.func @transform_4(%arg0: i32) -> (i32, i32, i32) {
    %c0_i32 = arith.constant 0 : i32
    %c0_i32_0 = arith.constant 0 : i32
    %c0_i32_1 = arith.constant 0 : i32
    %c0_i32_2 = arith.constant 0 : i32
    return %c0_i32, %c0_i32_0, %c0_i32_1 : i32, i32, i32
  }
  func.func @transform_5(%arg0: i32) -> (i32, i32, i32) {
    %c0_i32 = arith.constant 0 : i32
    %c0_i32_0 = arith.constant 0 : i32
    %c0_i32_1 = arith.constant 0 : i32
    %c0_i32_2 = arith.constant 0 : i32
    return %c0_i32, %c0_i32_0, %c0_i32_1 : i32, i32, i32
  }
  func.func @transform_6(%arg0: i32) -> (i32, i32, i32) {
    %c0_i32 = arith.constant 0 : i32
    %c0_i32_0 = arith.constant 0 : i32
    %c0_i32_1 = arith.constant 0 : i32
    %c0_i32_2 = arith.constant 0 : i32
    return %c0_i32, %c0_i32_0, %c0_i32_1 : i32, i32, i32
  }
  func.func @transform_7(%arg0: i32) -> (i32, i32) {
    %c0_i32 = arith.constant 0 : i32
    %c0_i32_0 = arith.constant 0 : i32
    %c0_i32_1 = arith.constant 0 : i32
    return %c0_i32, %c0_i32_0 : i32, i32
  }
  func.func @transform_8(%arg0: i32) -> (i32, i32) {
    %c0_i32 = arith.constant 0 : i32
    %c0_i32_0 = arith.constant 0 : i32
    %c0_i32_1 = arith.constant 0 : i32
    return %c0_i32, %c0_i32_0 : i32, i32
  }
  func.func @transform_9(%arg0: i32) -> (i32, i32) {
    %c0_i32 = arith.constant 0 : i32
    %c0_i32_0 = arith.constant 0 : i32
    return %arg0, %c0_i32 : i32, i32
  }
}

</mosaic_0001>

<bundles_post_ra>
// kernel: mlp_decoder_forward.1
= control target key start
LH: loop header
LB: loop body
LE: loop exit
PB: predicated region body
PF: predicated region fallthrough
CT: control target
= control target key end

     0   :  { %v1090_v0 = vmov 0.0   ;;  %vm1091_vm0 = vmmov 0   ;;  %s1351_s1 = inlined_call_operand.vmem [shape: bf16[128,128], index: 1, kind: input, shape index: {}]   ;;  %s1352_s0 = inlined_call_operand.vmem [shape: bf16[8,128], index: 0, kind: input, shape index: {}]   ;;  %s1353_s2 = inlined_call_operand.vmem [shape: f32[1,128], index: 2, kind: input, shape index: {}]   ;;  %s1354_s5 = inlined_call_operand.vmem [shape: bf16[3,128,128], index: 5, kind: input, shape index: {}]   ;;  %s1355_s3 = inlined_call_operand.vmem [shape: f32[3,1,128], index: 3, kind: input, shape index: {}]   ;;  %s1356_s4 = inlined_call_operand.vmem [shape: f32[3,1,128], index: 4, kind: input, shape index: {}]   ;;  %s1357_s6 = inlined_call_operand.vmem [shape: f32[3,1,128], index: 6, kind: input, shape index: {}]   ;;  %s1358_s7 = inlined_call_operand.vmem [shape: bf16[128,128], index: 7, kind: input, shape index: {}]   ;;  %s1359_s8 = inlined_call_operand.vmem [shape: f32[1,128], index: 8, kind: input, shape index: {}]   ;;  %s1360_s9 = inlined_call_operand.vmem [shape: f32[8,128], index: 9, kind: output, shape index: {}]  }
   0x1   :  { %926 = vmatprep.subr.bf16.mxu0 %v1090_v0  ;;  %v1028_v1 = vld [vmem:[%s1351_s1] sm:$0xff]   ;;  %942 = vmatprep.mubr.msk.bf16.mxu0 %vm1091_vm0, %v1090_v0  ;;  %v1029_v2 = vld [vmem:[%s1351_s1 + $0x8] sm:$0xff]   ;;  %v1030_v3 = vld [vmem:[%s1351_s1 + $0x10] sm:$0xff]  }
   0x2   :  { %946 = vmatprep.subr.bf16.mxu1 %v1090_v0  ;;  %962 = vmatprep.mubr.msk.bf16.mxu1 %vm1091_vm0, %v1090_v0  ;;  %v1031_v4 = vld [vmem:[%s1351_s1 + $0x18] sm:$0xff]   ;;  %v1032_v5 = vld [vmem:[%s1351_s1 + $0x20] sm:$0xff]   ;;  %v1033_v6 = vld [vmem:[%s1351_s1 + $0x28] sm:$0xff]  }
   0x3   :  { %927 = vmatpush3.bf16.msra.mxu0 %v1028_v1  ;;  %v1034_v7 = vld [vmem:[%s1351_s1 + $0x30] sm:$0xff]   ;;  %v1035_v8 = vld [vmem:[%s1351_s1 + $0x38] sm:$0xff]   ;;  %v33_v9 = vld [vmem:[%s1352_s0] sm:$0xf] }
   0x4   :  { %928 = vmatprep.subr.bf16.mxu0 %v1090_v0  ;;  %v792_v10 = vld [vmem:[%s1353_s2] ss:$0 sm:$0xff]  ;;  %v1037_v42 = vld [vmem:[%s1354_s5 + $0x8] sm:$0xff]   ;;  %v1038_v47 = vld [vmem:[%s1354_s5 + $0x10] sm:$0xff]  }
   0x5   :  { %v1036_v41 = vld [vmem:[%s1354_s5] sm:$0xff]   ;;  %v1039_v48 = vld [vmem:[%s1354_s5 + $0x18] sm:$0xff]   ;;  %v1041_v50 = vld [vmem:[%s1354_s5 + $0x28] sm:$0xff]  }
   0x6   :  { %947 = vmatpush3.bf16.msra.mxu1 %v1036_v41  ;;  %v1040_v49 = vld [vmem:[%s1354_s5 + $0x20] sm:$0xff]   ;;  %v1042_v51 = vld [vmem:[%s1354_s5 + $0x30] sm:$0xff]   ;;  %v1043_v52 = vld [vmem:[%s1354_s5 + $0x38] sm:$0xff]  }
   0x7   :  { %929 = vmatpush3.bf16.msra.mxu0 %v1029_v2  ;;  %948 = vmatprep.subr.bf16.mxu1 %v1090_v0  ;;  %v801_v57 = vld [vmem:[%s1355_s3] ss:$0 sm:$0xff]  ;;  %v1050_v41 = vld [vmem:[%s1354_s5 + $0x70] sm:$0xff]  }
   0x8   :  { %930 = vmatprep.subr.bf16.mxu0 %v1090_v0  ;;  %v802_v59 = vld [vmem:[%s1356_s4] ss:$0 sm:$0xff] }
   0x9   :  { %v803_v63 = vld [vmem:[%s1357_s6] ss:$0 sm:$0xff] }
   0xa   :  { %949 = vmatpush3.bf16.msra.mxu1 %v1037_v42  ;;  %v1051_v42 = vld [vmem:[%s1354_s5 + $0x78] sm:$0xff]  }
   0xb   :  { %931 = vmatpush3.bf16.msra.mxu0 %v1030_v3  ;;  %950 = vmatprep.subr.bf16.mxu1 %v1090_v0 }
   0xc   :  { %932 = vmatprep.subr.bf16.mxu0 %v1090_v0 }
   0xe   :  { %951 = vmatpush3.bf16.msra.mxu1 %v1038_v47  ;;  %v814_v47 = vld [vmem:[%s1355_s3 + $0x1] ss:$0 sm:$0xff] }
   0xf   :  { %933 = vmatpush3.bf16.msra.mxu0 %v1031_v4  ;;  %952 = vmatprep.subr.bf16.mxu1 %v1090_v0 }
  0x10   :  { %934 = vmatprep.subr.bf16.mxu0 %v1090_v0 }
  0x12   :  { %953 = vmatpush3.bf16.msra.mxu1 %v1039_v48 }
  0x13   :  { %935 = vmatpush3.bf16.msra.mxu0 %v1032_v5  ;;  %954 = vmatprep.subr.bf16.mxu1 %v1090_v0 }
  0x14   :  { %936 = vmatprep.subr.bf16.mxu0 %v1090_v0 }
  0x16   :  { %955 = vmatpush3.bf16.msra.mxu1 %v1040_v49  ;;  %v815_v49 = vld [vmem:[%s1356_s4 + $0x1] ss:$0 sm:$0xff] }
  0x17   :  { %937 = vmatpush3.bf16.msra.mxu0 %v1033_v6  ;;  %956 = vmatprep.subr.bf16.mxu1 %v1090_v0 }
  0x18   :  { %938 = vmatprep.subr.bf16.mxu0 %v1090_v0 }
  0x1a   :  { %957 = vmatpush3.bf16.msra.mxu1 %v1041_v50 }
  0x1b   :  { %939 = vmatpush3.bf16.msra.mxu0 %v1034_v7  ;;  %958 = vmatprep.subr.bf16.mxu1 %v1090_v0 }
  0x1c   :  { %940 = vmatprep.subr.bf16.mxu0 %v1090_v0 }
  0x1e   :  { %959 = vmatpush3.bf16.msra.mxu1 %v1042_v51 }
  0x1f   :  { %941 = vmatpush3.bf16.msra.mxu0 %v1035_v8  ;;  %960 = vmatprep.subr.bf16.mxu1 %v1090_v0 }
  0x20   :  { %966 = vmatprep.subr.bf16.mxu0 %v1090_v0 }
  0x22   :  { %943 = vmatmul.mubr.bf16.vlgmr.msra.gmra.mrb[0].mxu0 %v33_v9  ;;  %961 = vmatpush3.bf16.msra.mxu1 %v1043_v52 }
  0x23   :  { %982 = vmatprep.mubr.msk.bf16.mxu0 %vm1091_vm0, %v1090_v0  ;;  %986 = vmatprep.subr.bf16.mxu1 %v1090_v0 }
  0xf5   :  { %v139_v11 = vpop.f32.mrb[0].mxu0 }
  0xf6   :  { %v140_v12 = vadd.f32 %v792_v10, %v139_v11  ;;  %v944_v13 = vpop.f32.mrb[1].mxu0 }
  0xf7   :  { %v142_v14 = vpop.f32.mrb[2].mxu0 }
  0xf8   :  { %v146_v15 = vmul.f32 0.70710677, %v140_v12  ;;  %v945_v16 = vpop.f32.mrb[3].mxu0  ;;  %v145_v38 = vmul.f32 0.5, %v140_v12 }
  0xfa   :  { %v147_v17 = vand.u32 2147483647, %v146_v15  ;;  %vm166_vm1 = vcmp.ge.f32.partialorder %v146_v15, 0.0 }
  0xfc   :  { %v148_v18 = vmul.f32 0.3275911, %v147_v17  ;;  %v160_v20 = vsub.f32 0.0, %v147_v17 }
  0xfe   :  { %v149_v19 = vadd.f32 1.0, %v148_v18  ;;  %v161_v22 = vmul.f32 %v160_v20, %v147_v17 }
 0x100   :  { %1068 = vrcp.f32 %v149_v19  ;;  %v162_v25 = vmul.f32 1.442695, %v161_v22 }
 0x102   :  { %1070 = vpow2.f32 %v162_v25 }
 0x10a   :  { %v1069_v21 = vpop.eup %1068 }
 0x10b   :  { %v151_v23 = vmul.f32 1.0614054, %v1069_v21 }
 0x10c   :  { %v1071_v33 = vpop.eup %1070 }
 0x10d   :  { %v152_v24 = vadd.f32 -1.4531521, %v151_v23 }
 0x10f   :  { %v153_v26 = vmul.f32 %v1069_v21, %v152_v24 }
 0x111   :  { %v154_v27 = vadd.f32 1.4214138, %v153_v26 }
 0x113   :  { %v155_v28 = vmul.f32 %v1069_v21, %v154_v27 }
 0x115   :  { %v156_v29 = vadd.f32 -0.28449672, %v155_v28 }
 0x117   :  { %v157_v30 = vmul.f32 %v1069_v21, %v156_v29 }
 0x119   :  { %v158_v31 = vadd.f32 0.2548296, %v157_v30 }
 0x11b   :  { %v159_v32 = vmul.f32 %v1069_v21, %v158_v31  ;;  %v1044_v31 = vld [vmem:[%s1354_s5 + $0x40] sm:$0xff]  }
 0x11c   :  { %967 = vmatpush3.bf16.msra.mxu0 %v1044_v31  ;;  %v1058_v31 = vld [vmem:[%s1354_s5 + $0xb0] sm:$0xff]  }
 0x11d   :  { %v164_v34 = vmul.f32 %v1071_v33, %v159_v32  ;;  %v1045_v32 = vld [vmem:[%s1354_s5 + $0x48] sm:$0xff]   ;;  %968 = vmatprep.subr.bf16.mxu0 %v1090_v0 }
 0x11f   :  { %v165_v35 = vsub.f32 1.0, %v164_v34 }
 0x120   :  { %969 = vmatpush3.bf16.msra.mxu0 %v1045_v32  ;;  %v1059_v32 = vld [vmem:[%s1354_s5 + $0xb8] sm:$0xff]  }
 0x121   :  { %v167_v36 = vsub.f32 0.0, %v165_v35  ;;  %970 = vmatprep.subr.bf16.mxu0 %v1090_v0 }
 0x123   :  { %v168_v37 = vsel %vm166_vm1, %v165_v35, %v167_v36 }
 0x124   :  { %v169_v39 = vadd.f32 1.0, %v168_v37  ;;  %v1046_v37 = vld [vmem:[%s1354_s5 + $0x50] sm:$0xff]  }
 0x125   :  { %971 = vmatpush3.bf16.msra.mxu0 %v1046_v37  ;;  %v844_v37 = vld [vmem:[%s1355_s3 + $0x2] ss:$0 sm:$0xff] }
 0x126   :  { %v170_v40 = vmul.f32 %v169_v39, %v145_v38  ;;  %972 = vmatprep.subr.bf16.mxu0 %v1090_v0  ;;  %v1047_v38 = vld [vmem:[%s1354_s5 + $0x58] sm:$0xff]   ;;  %v1048_v39 = vld [vmem:[%s1354_s5 + $0x60] sm:$0xff]  }
 0x128   :  { %173 = vadd.xlane.f32.xlu0 %v170_v40 }
 0x129   :  { %973 = vmatpush3.bf16.msra.mxu0 %v1047_v38 }
 0x12a   :  { %974 = vmatprep.subr.bf16.mxu0 %v1090_v0 }
 0x12d   :  { %975 = vmatpush3.bf16.msra.mxu0 %v1048_v39  ;;  %v845_v39 = vld [vmem:[%s1356_s4 + $0x2] ss:$0 sm:$0xff] }
 0x12e   :  { %976 = vmatprep.subr.bf16.mxu0 %v1090_v0 }
 0x1b5   :  { %v174_v43 = vpop.xlane.xlu0 %173 }
 0x1b6   :  { %v176_v44 = vmul.f32 0.0078125, %v174_v43 }
 0x1b8   :  { %v177_v45 = vsub.f32 %v170_v40, %v176_v44  ;;  %v1049_v40 = vld [vmem:[%s1354_s5 + $0x68] sm:$0xff]  }
 0x1b9   :  { %977 = vmatpush3.bf16.msra.mxu0 %v1049_v40 }
 0x1ba   :  { %v178_v46 = vmul.f32 %v177_v45, %v177_v45  ;;  %978 = vmatprep.subr.bf16.mxu0 %v1090_v0 }
 0x1bc   :  { %179 = vadd.xlane.f32.xlu0 %v178_v46 }
 0x1bd   :  { %979 = vmatpush3.bf16.msra.mxu0 %v1050_v41 }
 0x1be   :  { %980 = vmatprep.subr.bf16.mxu0 %v1090_v0 }
 0x1c1   :  { %981 = vmatpush3.bf16.msra.mxu0 %v1051_v42 }
 0x1c2   :  { %1006 = vmatprep.subr.bf16.mxu0 %v1090_v0 }
 0x249   :  { %v180_v53 = vpop.xlane.xlu0 %179 }
 0x24a   :  { %v181_v54 = vmul.f32 0.0078125, %v180_v53  ;;  %v833_v53 = vld [vmem:[%s1357_s6 + $0x1] ss:$0 sm:$0xff] }
 0x24c   :  { %v182_v55 = vadd.f32 1e-05, %v181_v54 }
 0x24e   :  { %1072 = vrsqrt.f32 %v182_v55 }
 0x258   :  { %v1073_v56 = vpop.eup %1072 }
 0x259   :  { %v184_v58 = vmul.f32 %v1073_v56, %v177_v45 }
 0x25b   :  { %v191_v60 = vmul.f32 %v801_v57, %v184_v58 }
 0x25d   :  { %v198_v61 = vadd.f32 %v802_v59, %v191_v60 }
 0x25f   :  { %v199_v62 = vpack.c.bf16 %v198_v61, %v198_v61 }
 0x261   :  { %963 = vmatmul.mubr.bf16.vlgmr.msra.gmra.mrb[0].mxu1 %v199_v62 }
 0x262   :  { %1002 = vmatprep.mubr.msk.bf16.mxu1 %vm1091_vm0, %v1090_v0 }
 0x334   :  { %v305_v1 = vpop.f32.mrb[0].mxu1 }
 0x335   :  { %v306_v2 = vadd.f32 %v803_v63, %v305_v1  ;;  %v964_v3 = vpop.f32.mrb[1].mxu1 }
 0x336   :  { %v308_v4 = vpop.f32.mrb[2].mxu1 }
 0x337   :  { %v312_v5 = vmul.f32 0.70710677, %v306_v2  ;;  %v965_v6 = vpop.f32.mrb[3].mxu1  ;;  %v311_v28 = vmul.f32 0.5, %v306_v2 }
 0x339   :  { %v313_v7 = vand.u32 2147483647, %v312_v5  ;;  %vm332_vm2 = vcmp.ge.f32.partialorder %v312_v5, 0.0 }
 0x33b   :  { %v314_v8 = vmul.f32 0.3275911, %v313_v7  ;;  %v326_v10 = vsub.f32 0.0, %v313_v7 }
 0x33d   :  { %v315_v9 = vadd.f32 1.0, %v314_v8  ;;  %v327_v12 = vmul.f32 %v326_v10, %v313_v7 }
 0x33f   :  { %1074 = vrcp.f32 %v315_v9  ;;  %v328_v15 = vmul.f32 1.442695, %v327_v12 }
 0x341   :  { %1076 = vpow2.f32 %v328_v15 }
 0x349   :  { %v1075_v11 = vpop.eup %1074 }
 0x34a   :  { %v317_v13 = vmul.f32 1.0614054, %v1075_v11 }
 0x34b   :  { %v1077_v23 = vpop.eup %1076 }
 0x34c   :  { %v318_v14 = vadd.f32 -1.4531521, %v317_v13 }
 0x34e   :  { %v319_v16 = vmul.f32 %v1075_v11, %v318_v14 }
 0x350   :  { %v320_v17 = vadd.f32 1.4214138, %v319_v16 }
 0x352   :  { %v321_v18 = vmul.f32 %v1075_v11, %v320_v17 }
 0x354   :  { %v322_v19 = vadd.f32 -0.28449672, %v321_v18 }
 0x356   :  { %v323_v20 = vmul.f32 %v1075_v11, %v322_v19 }
 0x358   :  { %v324_v21 = vadd.f32 0.2548296, %v323_v20 }
 0x35a   :  { %v325_v22 = vmul.f32 %v1075_v11, %v324_v21  ;;  %v1052_v21 = vld [vmem:[%s1354_s5 + $0x80] sm:$0xff]  }
 0x35b   :  { %987 = vmatpush3.bf16.msra.mxu1 %v1052_v21 }
 0x35c   :  { %v330_v24 = vmul.f32 %v1077_v23, %v325_v22  ;;  %v1053_v22 = vld [vmem:[%s1354_s5 + $0x88] sm:$0xff]   ;;  %988 = vmatprep.subr.bf16.mxu1 %v1090_v0 }
 0x35e   :  { %v331_v25 = vsub.f32 1.0, %v330_v24 }
 0x35f   :  { %989 = vmatpush3.bf16.msra.mxu1 %v1053_v22 }
 0x360   :  { %v333_v26 = vsub.f32 0.0, %v331_v25  ;;  %990 = vmatprep.subr.bf16.mxu1 %v1090_v0 }
 0x362   :  { %v334_v27 = vsel %vm332_vm2, %v331_v25, %v333_v26 }
 0x363   :  { %v335_v29 = vadd.f32 1.0, %v334_v27  ;;  %v1054_v27 = vld [vmem:[%s1354_s5 + $0x90] sm:$0xff]  }
 0x364   :  { %991 = vmatpush3.bf16.msra.mxu1 %v1054_v27 }
 0x365   :  { %v336_v30 = vmul.f32 %v335_v29, %v311_v28  ;;  %992 = vmatprep.subr.bf16.mxu1 %v1090_v0  ;;  %v1055_v28 = vld [vmem:[%s1354_s5 + $0x98] sm:$0xff]   ;;  %v1056_v29 = vld [vmem:[%s1354_s5 + $0xa0] sm:$0xff]  }
 0x367   :  { %341 = vadd.xlane.f32.xlu1 %v336_v30 }
 0x368   :  { %993 = vmatpush3.bf16.msra.mxu1 %v1055_v28 }
 0x369   :  { %994 = vmatprep.subr.bf16.mxu1 %v1090_v0 }
 0x36c   :  { %995 = vmatpush3.bf16.msra.mxu1 %v1056_v29 }
 0x36d   :  { %996 = vmatprep.subr.bf16.mxu1 %v1090_v0 }
 0x3f4   :  { %v342_v33 = vpop.xlane.xlu1 %341 }
 0x3f5   :  { %v343_v34 = vmul.f32 0.0078125, %v342_v33 }
 0x3f7   :  { %v344_v35 = vsub.f32 %v336_v30, %v343_v34  ;;  %v1057_v30 = vld [vmem:[%s1354_s5 + $0xa8] sm:$0xff]  }
 0x3f8   :  { %997 = vmatpush3.bf16.msra.mxu1 %v1057_v30 }
 0x3f9   :  { %v345_v36 = vmul.f32 %v344_v35, %v344_v35  ;;  %998 = vmatprep.subr.bf16.mxu1 %v1090_v0 }
 0x3fb   :  { %346 = vadd.xlane.f32.xlu1 %v345_v36 }
 0x3fc   :  { %999 = vmatpush3.bf16.msra.mxu1 %v1058_v31 }
 0x3fd   :  { %1000 = vmatprep.subr.bf16.mxu1 %v1090_v0 }
 0x400   :  { %1001 = vmatpush3.bf16.msra.mxu1 %v1059_v32 }
 0x488   :  { %v347_v43 = vpop.xlane.xlu1 %346 }
 0x489   :  { %v348_v44 = vmul.f32 0.0078125, %v347_v43  ;;  %v1060_v43 = vld [vmem:[%s1358_s7] sm:$0xff]  }
 0x48b   :  { %v349_v45 = vadd.f32 1e-05, %v348_v44  ;;  %v1061_v44 = vld [vmem:[%s1358_s7 + $0x8] sm:$0xff]  }
 0x48d   :  { %1078 = vrsqrt.f32 %v349_v45  ;;  %v1062_v45 = vld [vmem:[%s1358_s7 + $0x10] sm:$0xff]  }
 0x497   :  { %v1079_v46 = vpop.eup %1078 }
 0x498   :  { %v351_v48 = vmul.f32 %v1079_v46, %v344_v35  ;;  %v1063_v46 = vld [vmem:[%s1358_s7 + $0x18] sm:$0xff]  }
 0x49a   :  { %v358_v50 = vmul.f32 %v814_v47, %v351_v48  ;;  %v1064_v47 = vld [vmem:[%s1358_s7 + $0x20] sm:$0xff]   ;;  %v1065_v48 = vld [vmem:[%s1358_s7 + $0x28] sm:$0xff]  }
 0x49c   :  { %v365_v51 = vadd.f32 %v815_v49, %v358_v50  ;;  %v1066_v49 = vld [vmem:[%s1358_s7 + $0x30] sm:$0xff]   ;;  %v1067_v50 = vld [vmem:[%s1358_s7 + $0x38] sm:$0xff]  }
 0x49e   :  { %v366_v52 = vpack.c.bf16 %v365_v51, %v365_v51  ;;  %v863_v51 = vld [vmem:[%s1357_s6 + $0x2] ss:$0 sm:$0xff] }
 0x4a0   :  { %983 = vmatmul.mubr.bf16.vlgmr.msra.gmra.mrb[4].mxu0 %v366_v52 }
 0x4a1   :  { %1022 = vmatprep.mubr.msk.bf16.mxu0 %vm1091_vm0, %v1090_v0  ;;  %1007 = vmatpush3.bf16.msra.mxu0 %v1060_v43 }
 0x4a2   :  { %1008 = vmatprep.subr.bf16.mxu0 %v1090_v0 }
 0x4a5   :  { %1009 = vmatpush3.bf16.msra.mxu0 %v1061_v44 }
 0x4a6   :  { %1010 = vmatprep.subr.bf16.mxu0 %v1090_v0 }
 0x4a9   :  { %1011 = vmatpush3.bf16.msra.mxu0 %v1062_v45 }
 0x4aa   :  { %1012 = vmatprep.subr.bf16.mxu0 %v1090_v0 }
 0x4ad   :  { %1013 = vmatpush3.bf16.msra.mxu0 %v1063_v46 }
 0x4ae   :  { %1014 = vmatprep.subr.bf16.mxu0 %v1090_v0 }
 0x4b1   :  { %1015 = vmatpush3.bf16.msra.mxu0 %v1064_v47 }
 0x4b2   :  { %1016 = vmatprep.subr.bf16.mxu0 %v1090_v0 }
 0x4b5   :  { %1017 = vmatpush3.bf16.msra.mxu0 %v1065_v48 }
 0x4b6   :  { %1018 = vmatprep.subr.bf16.mxu0 %v1090_v0 }
 0x4b9   :  { %1019 = vmatpush3.bf16.msra.mxu0 %v1066_v49 }
 0x4ba   :  { %1020 = vmatprep.subr.bf16.mxu0 %v1090_v0 }
 0x4bd   :  { %1021 = vmatpush3.bf16.msra.mxu0 %v1067_v50 }
 0x573   :  { %v474_v54 = vpop.f32.mrb[4].mxu0 }
 0x574   :  { %v475_v55 = vadd.f32 %v833_v53, %v474_v54  ;;  %v984_v56 = vpop.f32.mrb[5].mxu0 }
 0x575   :  { %v477_v57 = vpop.f32.mrb[6].mxu0 }
 0x576   :  { %v481_v58 = vmul.f32 0.70710677, %v475_v55  ;;  %v985_v59 = vpop.f32.mrb[7].mxu0  ;;  %v480_v18 = vmul.f32 0.5, %v475_v55 }
 0x578   :  { %v482_v60 = vand.u32 2147483647, %v481_v58  ;;  %vm501_vm3 = vcmp.ge.f32.partialorder %v481_v58, 0.0 }
 0x57a   :  { %v483_v61 = vmul.f32 0.3275911, %v482_v60  ;;  %v495_v63 = vsub.f32 0.0, %v482_v60 }
 0x57c   :  { %v484_v62 = vadd.f32 1.0, %v483_v61  ;;  %v496_v2 = vmul.f32 %v495_v63, %v482_v60 }
 0x57e   :  { %1080 = vrcp.f32 %v484_v62  ;;  %v497_v5 = vmul.f32 1.442695, %v496_v2 }
 0x580   :  { %1082 = vpow2.f32 %v497_v5 }
 0x588   :  { %v1081_v1 = vpop.eup %1080 }
 0x589   :  { %v486_v3 = vmul.f32 1.0614054, %v1081_v1 }
 0x58a   :  { %v1083_v13 = vpop.eup %1082 }
 0x58b   :  { %v487_v4 = vadd.f32 -1.4531521, %v486_v3 }
 0x58d   :  { %v488_v6 = vmul.f32 %v1081_v1, %v487_v4 }
 0x58f   :  { %v489_v7 = vadd.f32 1.4214138, %v488_v6 }
 0x591   :  { %v490_v8 = vmul.f32 %v1081_v1, %v489_v7 }
 0x593   :  { %v491_v9 = vadd.f32 -0.28449672, %v490_v8 }
 0x595   :  { %v492_v10 = vmul.f32 %v1081_v1, %v491_v9 }
 0x597   :  { %v493_v11 = vadd.f32 0.2548296, %v492_v10 }
 0x599   :  { %v494_v12 = vmul.f32 %v1081_v1, %v493_v11 }
 0x59b   :  { %v499_v14 = vmul.f32 %v1083_v13, %v494_v12 }
 0x59d   :  { %v500_v15 = vsub.f32 1.0, %v499_v14 }
 0x59f   :  { %v502_v16 = vsub.f32 0.0, %v500_v15 }
 0x5a1   :  { %v503_v17 = vsel %vm501_vm3, %v500_v15, %v502_v16 }
 0x5a2   :  { %v504_v19 = vadd.f32 1.0, %v503_v17 }
 0x5a4   :  { %v505_v20 = vmul.f32 %v504_v19, %v480_v18  ;;  %v872_v19 = vld [vmem:[%s1359_s8] ss:$0 sm:$0xff] }
 0x5a6   :  { %510 = vadd.xlane.f32.xlu0 %v505_v20 }
 0x633   :  { %v511_v23 = vpop.xlane.xlu0 %510 }
 0x634   :  { %v512_v24 = vmul.f32 0.0078125, %v511_v23 }
 0x636   :  { %v513_v25 = vsub.f32 %v505_v20, %v512_v24 }
 0x638   :  { %v514_v26 = vmul.f32 %v513_v25, %v513_v25 }
 0x63a   :  { %515 = vadd.xlane.f32.xlu1 %v514_v26 }
 0x6c7   :  { %v516_v33 = vpop.xlane.xlu1 %515 }
 0x6c8   :  { %v517_v34 = vmul.f32 0.0078125, %v516_v33 }
 0x6ca   :  { %v518_v35 = vadd.f32 1e-05, %v517_v34 }
 0x6cc   :  { %1084 = vrsqrt.f32 %v518_v35 }
 0x6d6   :  { %v1085_v36 = vpop.eup %1084 }
 0x6d7   :  { %v520_v38 = vmul.f32 %v1085_v36, %v513_v25 }
 0x6d9   :  { %v527_v40 = vmul.f32 %v844_v37, %v520_v38 }
 0x6db   :  { %v534_v41 = vadd.f32 %v845_v39, %v527_v40 }
 0x6dd   :  { %v535_v42 = vpack.c.bf16 %v534_v41, %v534_v41 }
 0x6df   :  { %1003 = vmatmul.mubr.bf16.vlgmr.msra.gmra.mrb[4].mxu1 %v535_v42 }
 0x7b2   :  { %v643_v52 = vpop.f32.mrb[4].mxu1 }
 0x7b3   :  { %v644_v53 = vadd.f32 %v863_v51, %v643_v52  ;;  %v1004_v54 = vpop.f32.mrb[5].mxu1 }
 0x7b4   :  { %v646_v55 = vpop.f32.mrb[6].mxu1 }
 0x7b5   :  { %v650_v56 = vmul.f32 0.70710677, %v644_v53  ;;  %v1005_v57 = vpop.f32.mrb[7].mxu1  ;;  %v649_v15 = vmul.f32 0.5, %v644_v53 }
 0x7b7   :  { %v651_v58 = vand.u32 2147483647, %v650_v56  ;;  %vm670_vm4 = vcmp.ge.f32.partialorder %v650_v56, 0.0 }
 0x7b9   :  { %v652_v59 = vmul.f32 0.3275911, %v651_v58  ;;  %v664_v0 = vsub.f32 0.0, %v651_v58 }
 0x7bb   :  { %v653_v60 = vadd.f32 1.0, %v652_v59  ;;  %v665_v62 = vmul.f32 %v664_v0, %v651_v58 }
 0x7bd   :  { %1086 = vrcp.f32 %v653_v60  ;;  %v666_v2 = vmul.f32 1.442695, %v665_v62 }
 0x7bf   :  { %1088 = vpow2.f32 %v666_v2 }
 0x7c7   :  { %v1087_v61 = vpop.eup %1086 }
 0x7c8   :  { %v655_v63 = vmul.f32 1.0614054, %v1087_v61 }
 0x7c9   :  { %v1089_v10 = vpop.eup %1088 }
 0x7ca   :  { %v656_v1 = vadd.f32 -1.4531521, %v655_v63 }
 0x7cc   :  { %v657_v3 = vmul.f32 %v1087_v61, %v656_v1 }
 0x7ce   :  { %v658_v4 = vadd.f32 1.4214138, %v657_v3 }
 0x7d0   :  { %v659_v5 = vmul.f32 %v1087_v61, %v658_v4 }
 0x7d2   :  { %v660_v6 = vadd.f32 -0.28449672, %v659_v5 }
 0x7d4   :  { %v661_v7 = vmul.f32 %v1087_v61, %v660_v6 }
 0x7d6   :  { %v662_v8 = vadd.f32 0.2548296, %v661_v7 }
 0x7d8   :  { %v663_v9 = vmul.f32 %v1087_v61, %v662_v8 }
 0x7da   :  { %v668_v11 = vmul.f32 %v1089_v10, %v663_v9 }
 0x7dc   :  { %v669_v12 = vsub.f32 1.0, %v668_v11 }
 0x7de   :  { %v671_v13 = vsub.f32 0.0, %v669_v12 }
 0x7e0   :  { %v672_v14 = vsel %vm670_vm4, %v669_v12, %v671_v13 }
 0x7e1   :  { %v673_v16 = vadd.f32 1.0, %v672_v14 }
 0x7e3   :  { %v674_v17 = vmul.f32 %v673_v16, %v649_v15 }
 0x7e5   :  { %v675_v18 = vpack.c.bf16 %v674_v17, %v674_v17 }
 0x7e7   :  { %1023 = vmatmul.mubr.bf16.vlgmr.msra.gmra.mrb[8].mxu0 %v675_v18 }
 0x8ba   :  { %v781_v20 = vpop.f32.mrb[8].mxu0 }
 0x8bb   :  { %v782_v21 = vadd.f32 %v872_v19, %v781_v20  ;;  %v1024_v22 = vpop.f32.mrb[9].mxu0 }
 0x8bc   :  { %v784_v23 = vpop.f32.mrb[10].mxu0 }
 0x8bd   :  { %787 = vst [vmem:[%s1360_s9] sm:$0xff] %v782_v21  ;;  %v1025_v24 = vpop.f32.mrb[11].mxu0 }

</bundles_post_ra>
